<compile_context>
chip_gen: v5e
topology: v5e:2x2
jax: 0.10.0
libtpu: 0.0.40
codegen_flags: <defaults>
</compile_context>

<pallas_src>
import jax
import jax.numpy as jnp
from jax.experimental import pallas as pl
from jax.experimental.pallas import tpu as pltpu

HIDDEN = 30          # fixed by the module definition (fc1 -> 30 units)
HIDDEN_PAD = 32      # zero-padded hidden width; pad region is inert (see below)
ACTION_BOUND = 2.0   # actions = tanh(...) * 2
TILE_B = 512         # batched-path tile; B rows sit on the lane axis (mult. of 128)


def _round_up(n, m):
    return (n + m - 1) // m * m


# ----------------------------------------------------------------------------
# Rollout kernel: tiny B, row-major [B, s_dim] -> [B, a_dim], all f32.
# Packed params: p1 = [[W1^T] ; [b1]]  shape (s_dim+1, HIDDEN_PAD)
#                p2 = [[W2^T] ; [b2]]  shape (HIDDEN_PAD+1, a_dim)
# ----------------------------------------------------------------------------
def _actor_kernel_rows(x_ref, p1_ref, p2_ref, o_ref):
    s_dim = x_ref.shape[1]
    w1 = p1_ref[:s_dim, :]           # [s_dim, HIDDEN_PAD]
    b1 = p1_ref[s_dim:, :]           # [1, HIDDEN_PAD]
    w2 = p2_ref[:HIDDEN_PAD, :]      # [HIDDEN_PAD, a_dim]
    b2 = p2_ref[HIDDEN_PAD:, :]      # [1, a_dim]
    h = jnp.maximum(
        jnp.dot(x_ref[...], w1, preferred_element_type=jnp.float32) + b1, 0.0)
    y = jnp.dot(h, w2, preferred_element_type=jnp.float32) + b2
    o_ref[...] = (ACTION_BOUND * jnp.tanh(y)).astype(o_ref.dtype)
    # TODO(synk): DDPG exploration noise (pltpu.prng_seed / prng_random_bits)
    # and clipping could be fused here for free, but that would change the
    # module's forward semantics, so it is left out.


# ----------------------------------------------------------------------------
# Batched kernel: lane-dense, transposed math.  x^T: [s_dim, TILE_B] bf16.
# Packed params (bf16):
#   p1 = [W1 | b1]  shape (HIDDEN_PAD, s_dim+1)   (PyTorch [out,in] layout)
#   p2 = [W2 | b2]  shape (a_dim, HIDDEN_PAD+1)
# Output: [a_dim, TILE_B] f32 (full-width lane stores, no vst.msk).
# ----------------------------------------------------------------------------
def _actor_kernel_cols(xT_ref, p1_ref, p2_ref, oT_ref):
    s_dim = xT_ref.shape[0]
    w1 = p1_ref[:, :s_dim]                          # [HIDDEN_PAD, s_dim] bf16
    b1 = p1_ref[:, s_dim:].astype(jnp.float32)      # [HIDDEN_PAD, 1]
    w2 = p2_ref[:, :HIDDEN_PAD]                     # [a_dim, HIDDEN_PAD] bf16
    b2 = p2_ref[:, HIDDEN_PAD:].astype(jnp.float32) # [a_dim, 1]
    # h^T = relu(W1 @ x^T + b1)    (bf16 MXU inputs, f32 accumulate / activations)
    h = jnp.maximum(
        jnp.dot(w1, xT_ref[...], preferred_element_type=jnp.float32) + b1, 0.0)
    # y^T = W2 @ h^T + b2
    y = jnp.dot(w2, h.astype(jnp.bfloat16),
                preferred_element_type=jnp.float32) + b2
    oT_ref[...] = (ACTION_BOUND * jnp.tanh(y)).astype(oT_ref.dtype)


# ----------------------------------------------------------------------------
# One-time parameter prep (NOT in the per-call hot path).
# The 30 -> 32 zero padding is inert: zero weight column/row + zero bias
# -> relu(0) = 0 -> zero contribution through the zero rows/cols of W2.
# ----------------------------------------------------------------------------
def prepare_params(params):
    w1, b1, w2, b2 = params            # PyTorch layout: w1 [30, s], w2 [a, 30]
    s_dim = w1.shape[1]
    a_dim = w2.shape[0]

    # Rollout path slabs (f32, row-major math).
    p1_rows = jnp.zeros((s_dim + 1, HIDDEN_PAD), jnp.float32)
    p1_rows = p1_rows.at[:s_dim, :HIDDEN].set(w1.T).at[s_dim, :HIDDEN].set(b1)
    p2_rows = jnp.zeros((HIDDEN_PAD + 1, a_dim), jnp.float32)
    p2_rows = p2_rows.at[:HIDDEN, :].set(w2.T).at[HIDDEN_PAD, :].set(b2)

    # Batched path slabs (bf16, transposed / lane-dense math).
    p1_cols = jnp.zeros((HIDDEN_PAD, s_dim + 1), jnp.float32)
    p1_cols = p1_cols.at[:HIDDEN, :s_dim].set(w1).at[:HIDDEN, s_dim].set(b1)
    p2_cols = jnp.zeros((a_dim, HIDDEN_PAD + 1), jnp.float32)
    p2_cols = p2_cols.at[:, :HIDDEN].set(w2).at[:, HIDDEN_PAD].set(b2)

    return ((p1_rows, p2_rows),
            (p1_cols.astype(jnp.bfloat16), p2_cols.astype(jnp.bfloat16)))


# ----------------------------------------------------------------------------
# Wrappers
# ----------------------------------------------------------------------------
@jax.jit
def _actor_forward_rollout(x, packed):
    """Tiny-B path: single fused call, 3 operands, whole arrays in VMEM."""
    p1, p2 = packed
    B, _ = x.shape
    a_dim = p2.shape[1]
    Bp = max(8, _round_up(B, 8))            # pad to a full sublane
    xp = x.astype(jnp.float32)
    if Bp != B:
        xp = jnp.pad(xp, ((0, Bp - B), (0, 0)))
    out = pl.pallas_call(
        _actor_kernel_rows,
        out_shape=jax.ShapeDtypeStruct((Bp, a_dim), jnp.float32),
        in_specs=[pl.BlockSpec(memory_space=pltpu.MemorySpace.VMEM)] * 3,
        out_specs=pl.BlockSpec(memory_space=pltpu.MemorySpace.VMEM),
    )(xp, p1, p2)
    return out[:B]


@jax.jit
def _actor_forward_batched(x, packed):
    """Replay-buffer path: grid over B, lane-dense [a_dim, B] output, bf16 MXU."""
    p1, p2 = packed
    B, s_dim = x.shape
    a_dim = p2.shape[0]
    Bp = _round_up(B, TILE_B)
    xT = jnp.transpose(x).astype(jnp.bfloat16)      # [s_dim, B] layout plumbing
    if Bp != B:
        xT = jnp.pad(xT, ((0, 0), (0, Bp - B)))
    outT = pl.pallas_call(
        _actor_kernel_cols,
        out_shape=jax.ShapeDtypeStruct((a_dim, Bp), jnp.float32),
        grid=(Bp // TILE_B,),
        in_specs=[
            pl.BlockSpec((s_dim, TILE_B), lambda i: (0, i)),
            pl.BlockSpec((HIDDEN_PAD, s_dim + 1), lambda i: (0, 0)),
            pl.BlockSpec((a_dim, HIDDEN_PAD + 1), lambda i: (0, 0)),
        ],
        out_specs=pl.BlockSpec((a_dim, TILE_B), lambda i: (0, i)),
        compiler_params=pltpu.CompilerParams(
            dimension_semantics=("parallel",)),
    )(xT, p1, p2)
    return jnp.transpose(outT[:, :B])               # back to [B, a_dim]


def actor_forward(x, prepped):
    """x: [B, s_dim] -> actions [B, a_dim]. Picks the path from B (static)."""
    rollout_packed, batched_packed = prepped
    if x.shape[0] >= TILE_B:
        return _actor_forward_batched(x, batched_packed)
    return _actor_forward_rollout(x, rollout_packed)


def init_params(key, s_dim, a_dim):
    """Mirror the PyTorch module: weights ~ N(0, 0.1), biases = nn.Linear
    default U(-1/sqrt(fan_in), 1/sqrt(fan_in))."""
    k = jax.random.split(key, 4)
    w1 = 0.1 * jax.random.normal(k[0], (HIDDEN, s_dim), jnp.float32)
    b1 = jax.random.uniform(k[1], (HIDDEN,), jnp.float32,
                            -1.0 / jnp.sqrt(s_dim), 1.0 / jnp.sqrt(s_dim))
    w2 = 0.1 * jax.random.normal(k[2], (a_dim, HIDDEN), jnp.float32)
    b2 = jax.random.uniform(k[3], (a_dim,), jnp.float32,
                            -1.0 / jnp.sqrt(HIDDEN), 1.0 / jnp.sqrt(HIDDEN))
    return w1, b1, w2, b2


def _reference(x, params):
    w1, b1, w2, b2 = params
    return ACTION_BOUND * jnp.tanh(
        jnp.maximum(x @ w1.T + b1, 0.0) @ w2.T + b2)


if __name__ == "__main__":
    S_DIM, A_DIM = 8, 3

    key = jax.random.PRNGKey(0)
    kp, kx1, kx2 = jax.random.split(key, 3)
    params = init_params(kp, S_DIM, A_DIM)
    prepped = prepare_params(params)          # one-time; outside the hot path

    # --- rollout path (dispatch-bound, exact f32) -------------------------
    x_small = jax.random.normal(kx1, (4, S_DIM), jnp.float32)
    act_small = actor_forward(x_small, prepped)
    jax.block_until_ready(act_small)
    ref_small = _reference(x_small, params)
    assert act_small.shape == (4, A_DIM)
    assert jnp.allclose(act_small, ref_small, atol=1e-5, rtol=1e-5)

    # --- batched replay-buffer path (grid over B, lane-dense, bf16 MXU) ---
    x_big = jax.random.normal(kx2, (1000, S_DIM), jnp.float32)   # pads to 1024
    act_big = actor_forward(x_big, prepped)
    jax.block_until_ready(act_big)
    ref_big = _reference(x_big, params)
    assert act_big.shape == (1000, A_DIM)
    # bf16 matmul operands -> loosened tolerance (per review).
    assert jnp.allclose(act_big, ref_big, atol=5e-2, rtol=5e-2)

    print("KERNEL_OK")
</pallas_src>

<mosaic_0001>
module attributes {stable_mosaic.version = 11 : i64} {
  func.func @_actor_kernel_rows(%arg0: memref<8x8xf32, #tpu.memory_space<vmem>>, %arg1: memref<9x32xf32, #tpu.memory_space<vmem>>, %arg2: memref<33x3xf32, #tpu.memory_space<vmem>>, %arg3: memref<8x3xf32, #tpu.memory_space<vmem>>) attributes {dimension_semantics = [], scalar_prefetch = 0 : i64, scratch_operands = 0 : i64, tpu.core_type = #tpu.core_type<tc>} {
    %c0 = arith.constant 0 : index
    %c0_0 = arith.constant 0 : index
    %0 = vector.load %arg1[%c0, %c0_0] : memref<9x32xf32, #tpu.memory_space<vmem>>, vector<8x32xf32>
    %c8 = arith.constant 8 : index
    %c0_1 = arith.constant 0 : index
    %1 = vector.load %arg1[%c8, %c0_1] : memref<9x32xf32, #tpu.memory_space<vmem>>, vector<1x32xf32>
    %c0_2 = arith.constant 0 : index
    %c0_3 = arith.constant 0 : index
    %2 = vector.load %arg2[%c0_2, %c0_3] : memref<33x3xf32, #tpu.memory_space<vmem>>, vector<32x3xf32>
    %c32 = arith.constant 32 : index
    %c0_4 = arith.constant 0 : index
    %3 = vector.load %arg2[%c32, %c0_4] : memref<33x3xf32, #tpu.memory_space<vmem>>, vector<1x3xf32>
    %c0_5 = arith.constant 0 : index
    %c0_6 = arith.constant 0 : index
    %4 = vector.load %arg0[%c0_5, %c0_6] : memref<8x8xf32, #tpu.memory_space<vmem>>, vector<8x8xf32>
    %cst = arith.constant dense<0.000000e+00> : vector<8x32xf32>
    %5 = tpu.matmul %4, %0, %cst {dimension_numbers = #tpu.dot_dimension_numbers<[1], [0], [0], [1], [0, 0, 1, 1], [], []>} : vector<8x8xf32>, vector<8x32xf32>, vector<8x32xf32> -> vector<8x32xf32>
    %6 = vector.broadcast %1 : vector<1x32xf32> to vector<8x32xf32>
    %7 = arith.addf %5, %6 : vector<8x32xf32>
    %cst_7 = arith.constant 0.000000e+00 : f32
    %8 = vector.broadcast %cst_7 : f32 to vector<8x32xf32>
    %9 = arith.maximumf %7, %8 : vector<8x32xf32>
    %cst_8 = arith.constant dense<0.000000e+00> : vector<8x3xf32>
    %10 = tpu.matmul %9, %2, %cst_8 {dimension_numbers = #tpu.dot_dimension_numbers<[1], [0], [0], [1], [0, 0, 1, 1], [], []>} : vector<8x32xf32>, vector<32x3xf32>, vector<8x3xf32> -> vector<8x3xf32>
    %11 = vector.broadcast %3 : vector<1x3xf32> to vector<8x3xf32>
    %12 = arith.addf %10, %11 : vector<8x3xf32>
    %13 = math.tanh %12 : vector<8x3xf32>
    %cst_9 = arith.constant 2.000000e+00 : f32
    %14 = vector.broadcast %cst_9 : f32 to vector<8x3xf32>
    %15 = arith.mulf %14, %13 : vector<8x3xf32>
    %c0_10 = arith.constant 0 : index
    %c0_11 = arith.constant 0 : index
    %16 = vector.load %arg3[%c0_10, %c0_11] : memref<8x3xf32, #tpu.memory_space<vmem>>, vector<8x3xf32>
    tpu.vector_store %arg3[%c0_10, %c0_11], %15 {strides = array<i32>} : memref<8x3xf32, #tpu.memory_space<vmem>>, vector<8x3xf32>,
    return
  }
}

</mosaic_0001>

<bundles_post_ra>
// kernel: _actor_forward_rollout.1
= control target key start
LH: loop header
LB: loop body
LE: loop exit
PB: predicated region body
PF: predicated region fallthrough
CT: control target
= control target key end

     0   :  { %vm23_vm0 = vcmask 64512   ;;  %vm49_vm1 = vcmask 261120   ;;  %vm75_vm2 = vcmask 23552   ;;  %s134_s1 = inlined_call_operand.vmem [shape: f32[9,32], index: 1, kind: input, shape index: {}]   ;;  %s135_s0 = inlined_call_operand.vmem [shape: f32[8,8], index: 0, kind: input, shape index: {}]   ;;  %s136_s2 = inlined_call_operand.vmem [shape: f32[33,3], index: 2, kind: input, shape index: {}]   ;;  %s137_s3 = inlined_call_operand.vmem [shape: f32[8,3], index: 3, kind: output, shape index: {}]  }
   0x1   :  { %v14_v0 = vld [vmem:[%s134_s1] sm:$0xff]  ;;  %v19_v2 = vld [vmem:[%s136_s2 + $0x18] sm:$0xff]  ;;  %v18_v3 = vld [vmem:[%s136_s2 + $0x10] sm:$0xff] }
   0x2   :  { %42 = vmatpush.msra.mxu0 %v14_v0  ;;  %v21_v1 = vld [vmem:[%s135_s0] sm:$0xff]  ;;  %65 = vmatpush.msra.mxu1 %v19_v2  ;;  %v17_v4 = vld [vmem:[%s136_s2 + $0x8] sm:$0xff] }
   0x3   :  { %81 = vmatmul.msk.f32.vlgmr.msra.gmra.mxu0 %vm23_vm0, %v21_v1  ;;  %v16_v5 = vld [vmem:[%s136_s2] sm:$0xff]  ;;  %v83_v6 = vld [vmem:[%s134_s1 + $0x8] ss:$0 sm:$0xff] }
   0x4   :  { %66 = vmatpush.msra.mxu1 %v18_v3  ;;  %v84_v10 = vld [vmem:[%s136_s2 + $0x20] ss:$0 sm:$0xff] }
   0x6   :  { %67 = vmatpush.msra.mxu1 %v17_v4 }
   0x8   :  { %68 = vmatpush.msra.mxu1 %v16_v5 }
  0x80   :  { %v44_v7 = vpop.f32.mrf.mxu0 }
  0x81   :  { %v45_v8 = vadd.f32 %v83_v6, %v44_v7 }
  0x83   :  { %v47_v9 = vmax.f32 %v45_v8, 0.0 }
  0x85   :  { %82 = vmatmul.msk.f32.vlgmr.msra.gmra.mxu1 %vm49_vm1, %v47_v9 }
 0x102   :  { %v70_v11 = vpop.f32.mrf.mxu1 }
 0x103   :  { %v71_v12 = vadd.f32 %v84_v10, %v70_v11 }
 0x105   :  { %85 = vtanh.f32 %v71_v12 }
 0x10b   :  { %v86_v13 = vpop.eup %85 }
 0x10c   :  { %v74_v14 = vmul.f32 2.0, %v86_v13 }
 0x10e   :  { %76 = vst.msk [vmem:[%s137_s3] sm:$0xff] %vm75_vm2, %v74_v14 }

</bundles_post_ra>
